<compile_context>
chip_gen: v5e
topology: v5e:2x2
jax: 0.10.0
libtpu: 0.0.40
codegen_flags: <defaults>
</compile_context>

<pallas_src>
import functools
import math

import jax
import jax.numpy as jnp
import numpy as np
from jax.experimental import pallas as pl
from jax.experimental.pallas import tpu as pltpu


# ----------------------------------------------------------------------------
# PE table construction (replicates the PyTorch buffer).
# ----------------------------------------------------------------------------
def make_pe_table(d_model, max_len=100):
    """Returns the (max_len, d_model) float32 sin/cos table."""
    position = np.arange(max_len, dtype=np.float32)[:, None]
    div_term = np.exp(np.arange(0, d_model, 2, dtype=np.float32)
                      * (-math.log(10000.0) / d_model))
    pe = np.zeros((max_len, d_model), dtype=np.float32)
    pe[:, 0::2] = np.sin(position * div_term)
    cos_part = np.cos(position * div_term)
    if d_model % 2 == 0:
        pe[:, 1::2] = cos_part
    else:
        pe[:, 1::2] = cos_part[:, :-1]
    return jnp.asarray(pe)


# ----------------------------------------------------------------------------
# Kernel
# ----------------------------------------------------------------------------
def _pe_kernel(x_ref, pe_ref, *rest, n_rep, d, tile_s, p_drop,
               apply_dropout, pe_resident, split_batch):
    # x_ref: (tile_s, B*D); pe_ref: (tile_s, D) or resident (S, D);
    # optional bits_ref: (tile_s, B*D) uint32; o_ref: (tile_s, B*D)
    if apply_dropout:
        bits_ref, o_ref = rest
    else:
        bits_ref = None
        (o_ref,) = rest

    if pe_resident:
        start = pl.multiple_of(pl.program_id(0) * tile_s, tile_s)
        pe = pe_ref[pl.ds(start, tile_s), :].astype(jnp.float32)
    else:
        pe = pe_ref[...].astype(jnp.float32)

    if apply_dropout:
        inv_keep = jnp.float32(1.0 / (1.0 - p_drop))
        thresh = jnp.uint32(min(int(round(p_drop * 2.0 ** 32)), 2 ** 32 - 1))

    def add_and_drop(x_block, pe_block, bits_block):
        y = x_block.astype(jnp.float32) + pe_block
        if apply_dropout:
            keep = bits_block >= thresh            # P(keep) = 1 - p
            y = jnp.where(keep, y * inv_keep, jnp.float32(0.0))
        return y

    if split_batch:
        # D is lane-aligned: write each batch slice directly; no (tile, B*D)
        # pe_rep / y temporaries are ever materialized.
        for b in range(n_rep):
            sl = pl.ds(b * d, d)
            bits_b = bits_ref[:, sl] if apply_dropout else None
            o_ref[:, sl] = add_and_drop(x_ref[:, sl], pe, bits_b).astype(o_ref.dtype)
    else:
        pe_rep = pe if n_rep == 1 else jnp.concatenate([pe] * n_rep, axis=-1)
        bits = bits_ref[...] if apply_dropout else None
        o_ref[...] = add_and_drop(x_ref[...], pe_rep, bits).astype(o_ref.dtype)


# ----------------------------------------------------------------------------
# Tiling / VMEM budgeting
# ----------------------------------------------------------------------------
def _round_up(x, m):
    return ((x + m - 1) // m) * m


def _sublane_multiple(dtype):
    itemsize = jnp.dtype(dtype).itemsize
    return {4: 8, 2: 16, 1: 32}.get(itemsize, 8)


def _choose_tile_s(s, bd, d, x_bytes, o_bytes, with_dropout, sublane,
                   vmem_budget_bytes=20 * 1024 * 1024):
    """Pick the row-tile size; returns (tile_s, per_row_vmem_bytes)."""
    bits_bytes = 4 if with_dropout else 0
    # Double-buffered pipelined blocks: x, out, (bits), pe.
    blocks = 2 * (x_bytes + o_bytes + bits_bytes) * bd + 2 * 4 * d
    # In-kernel f32 temporaries (worst case, concat path): pe_rep + y (+ keep).
    temps = (8 + (4 if with_dropout else 0)) * bd
    row_bytes = blocks + temps

    if s <= sublane:
        return s, row_bytes

    max_rows = max(sublane, vmem_budget_bytes // max(row_bytes, 1))
    tile = min(s, max_rows, 2048)

    # Keep grid >= 2 (v7x has 2 TensorCores) once the array is big enough that
    # the ~0.35us fixed per-step cost is negligible (>= 1 MiB of input data).
    if tile >= s and s * bd * x_bytes >= (1 << 20):
        tile = min(tile, _round_up((s + 1) // 2, sublane))

    if tile < s:
        tile = max(sublane, (tile // sublane) * sublane)
        tile = min(tile, s)
    return tile, row_bytes


# ----------------------------------------------------------------------------
# pallas_call wrapper (jitted so input_output_aliases / donation are honored)
# ----------------------------------------------------------------------------
_STATIC_NAMES = ("tile_s", "grid_n", "p_drop", "apply_dropout", "pe_resident",
                 "split_batch", "n_rep", "d", "out_dtype_name", "vmem_limit",
                 "alias_x")


def _pe_call_impl(x2d, pe2d, bits, *, tile_s, grid_n, p_drop, apply_dropout,
                  pe_resident, split_batch, n_rep, d, out_dtype_name,
                  vmem_limit, alias_x):
    S, BD = x2d.shape
    out_dtype = jnp.dtype(out_dtype_name)

    kernel = functools.partial(
        _pe_kernel, n_rep=n_rep, d=d, tile_s=tile_s, p_drop=p_drop,
        apply_dropout=apply_dropout, pe_resident=pe_resident,
        split_batch=split_batch)

    in_specs = [pl.BlockSpec((tile_s, BD), lambda i: (i, 0))]
    if pe_resident:
        in_specs.append(pl.BlockSpec((S, d), lambda i: (0, 0)))   # resident table
    else:
        in_specs.append(pl.BlockSpec((tile_s, d), lambda i: (i, 0)))
    inputs = [x2d, pe2d]
    if apply_dropout:
        in_specs.append(pl.BlockSpec((tile_s, BD), lambda i: (i, 0)))
        inputs.append(bits)

    bytes_accessed = (S * BD * (x2d.dtype.itemsize + out_dtype.itemsize)
                      + S * d * 4
                      + (S * BD * 4 if apply_dropout else 0))
    cost = pl.CostEstimate(flops=S * BD * (2 if apply_dropout else 1),
                           transcendentals=0, bytes_accessed=bytes_accessed)

    return pl.pallas_call(
        kernel,
        out_shape=jax.ShapeDtypeStruct((S, BD), out_dtype),
        grid=(grid_n,),
        in_specs=in_specs,
        out_specs=pl.BlockSpec((tile_s, BD), lambda i: (i, 0)),
        compiler_params=pltpu.CompilerParams(
            dimension_semantics=("parallel",),      # shards S tiles across v7x TCs
            vmem_limit_bytes=vmem_limit),
        input_output_aliases={0: 0} if alias_x else {},
        cost_estimate=cost,
    )(*inputs)


_pe_call = jax.jit(_pe_call_impl, static_argnames=_STATIC_NAMES)
_pe_call_donated = jax.jit(_pe_call_impl, static_argnames=_STATIC_NAMES,
                           donate_argnums=(0,))


# ----------------------------------------------------------------------------
# Public forward
# ----------------------------------------------------------------------------
def positional_encoding(x, pe_table, *, p_drop=0.1, training=False,
                        rng_key=None, out_dtype=None, donate_x=False):
    """x: (S, B, D); pe_table: (max_len, D). Returns dropout(x + pe[:S, None, :])."""
    S, B, D = x.shape
    if S > pe_table.shape[0]:
        raise ValueError("sequence length exceeds max_len of the pe table")
    BD = B * D

    if out_dtype is None:
        # Matches PyTorch promotion (x + float32 buffer).
        out_dtype = jnp.promote_types(x.dtype, pe_table.dtype)
    out_dtype = jnp.dtype(out_dtype)

    apply_dropout = bool(training) and float(p_drop) > 0.0
    if apply_dropout and float(p_drop) >= 1.0:
        return jnp.zeros((S, B, D), out_dtype)

    x2d = x.reshape(S, BD)                    # free: merges contiguous trailing dims
    pe2d = pe_table[:S].astype(jnp.float32)   # (S, D)

    bits = None
    if apply_dropout:
        if rng_key is None:
            rng_key = jax.random.PRNGKey(0)
        bits = jax.random.bits(rng_key, (S, BD), dtype=jnp.uint32)

    x_bytes = x.dtype.itemsize
    o_bytes = out_dtype.itemsize
    sublane = max(_sublane_multiple(x.dtype), _sublane_multiple(out_dtype))
    tile_s, row_bytes = _choose_tile_s(S, BD, D, x_bytes, o_bytes,
                                       apply_dropout, sublane)
    grid_n = int(pl.cdiv(S, tile_s))
    pe_resident = (grid_n > 1) and (S % tile_s == 0) and (S * D * 4 <= (4 << 20))
    split_batch = (D % 128 == 0) and (B > 1)

    # Explicit scoped-VMEM limit covering blocks + in-kernel temporaries
    # (+ resident pe, double-buffered); clamped so it fits every chip (v7x 64 MiB).
    vmem_est = tile_s * row_bytes + (2 * S * D * 4 if pe_resident else 0)
    vmem_limit = int(min(max(vmem_est + (4 << 20), 24 << 20), 48 << 20))

    alias_x = bool(donate_x) and (out_dtype == x.dtype)
    call = _pe_call_donated if alias_x else _pe_call

    out2d = call(x2d, pe2d, bits,
                 tile_s=int(tile_s), grid_n=grid_n, p_drop=float(p_drop),
                 apply_dropout=apply_dropout, pe_resident=pe_resident,
                 split_batch=split_batch, n_rep=int(B), d=int(D),
                 out_dtype_name=out_dtype.name, vmem_limit=vmem_limit,
                 alias_x=alias_x)
    return out2d.reshape(S, B, D)


def positional_encoding_reference(x, pe_table):
    """Pure-JAX mirror of the PyTorch forward in eval mode (dropout = identity)."""
    S = x.shape[0]
    return x + pe_table[:S][:, None, :]


# ----------------------------------------------------------------------------
if __name__ == "__main__":
    d_model, max_len = 32, 100
    S, B = 8, 2                  # x is (seq, batch, d_model) as in the PyTorch module
    p_drop = 0.1

    key = jax.random.PRNGKey(0)
    x_key, drop_key = jax.random.split(key)
    x = jax.random.normal(x_key, (S, B, d_model), dtype=jnp.float32)
    pe_table = make_pe_table(d_model, max_len)

    # Eval mode (dropout = identity): exact check against the pure-JAX reference.
    out = jax.block_until_ready(
        positional_encoding(x, pe_table, p_drop=p_drop, training=False))
    ref = positional_encoding_reference(x, pe_table)
    assert out.shape == (S, B, d_model)
    np.testing.assert_allclose(np.asarray(out), np.asarray(ref), rtol=1e-6, atol=1e-6)

    # Train mode: each element is either dropped (0) or the reference scaled by 1/(1-p).
    out_tr = jax.block_until_ready(
        positional_encoding(x, pe_table, p_drop=p_drop, training=True,
                            rng_key=drop_key))
    out_tr_np = np.asarray(out_tr)
    scaled = np.asarray(ref) / (1.0 - p_drop)
    is_zero = np.isclose(out_tr_np, 0.0, atol=1e-6)
    is_kept = np.isclose(out_tr_np, scaled, rtol=1e-5, atol=1e-6)
    assert np.all(is_zero | is_kept)
    frac_dropped = float(np.mean(is_zero & ~np.isclose(scaled, 0.0, atol=1e-6)))
    assert 0.0 < frac_dropped < 0.5

    print("KERNEL_OK")
</pallas_src>

<mosaic_0001>
module attributes {stable_mosaic.version = 11 : i64} {
  func.func @_pe_kernel(%arg0: i32, %arg1: memref<8x64xf32, #tpu.memory_space<vmem>>, %arg2: memref<8x32xf32, #tpu.memory_space<vmem>>, %arg3: memref<8x64xf32, #tpu.memory_space<vmem>>) attributes {dimension_semantics = [#tpu.dimension_semantics<parallel>], iteration_bounds = array<i64: 1>, scalar_prefetch = 0 : i64, scratch_operands = 0 : i64, tpu.core_type = #tpu.core_type<tc>, window_params = [{transform_indices = @transform_0, window_bounds = array<i64: 8, 64>}, {transform_indices = @transform_1, window_bounds = array<i64: 8, 32>}, {transform_indices = @transform_2, window_bounds = array<i64: 8, 64>}]} {
    %c0 = arith.constant 0 : index
    %c0_0 = arith.constant 0 : index
    %0 = vector.load %arg2[%c0, %c0_0] : memref<8x32xf32, #tpu.memory_space<vmem>>, vector<8x32xf32>
    %1 = tpu.concatenate %0, %0 in 1 : vector<8x32xf32>, vector<8x32xf32> -> vector<8x64xf32>
    %c0_1 = arith.constant 0 : index
    %c0_2 = arith.constant 0 : index
    %2 = vector.load %arg1[%c0_1, %c0_2] : memref<8x64xf32, #tpu.memory_space<vmem>>, vector<8x64xf32>
    %3 = arith.addf %2, %1 : vector<8x64xf32>
    %c0_3 = arith.constant 0 : index
    %c0_4 = arith.constant 0 : index
    %4 = vector.load %arg3[%c0_3, %c0_4] : memref<8x64xf32, #tpu.memory_space<vmem>>, vector<8x64xf32>
    tpu.vector_store %arg3[%c0_3, %c0_4], %3 {strides = array<i32>} : memref<8x64xf32, #tpu.memory_space<vmem>>, vector<8x64xf32>,
    return
  }
  func.func @transform_0(%arg0: i32) -> (i32, i32) {
    %c0_i32 = arith.constant 0 : i32
    %c0_i32_0 = arith.constant 0 : i32
    return %arg0, %c0_i32 : i32, i32
  }
  func.func @transform_1(%arg0: i32) -> (i32, i32) {
    %c0_i32 = arith.constant 0 : i32
    %c0_i32_0 = arith.constant 0 : i32
    return %arg0, %c0_i32 : i32, i32
  }
  func.func @transform_2(%arg0: i32) -> (i32, i32) {
    %c0_i32 = arith.constant 0 : i32
    %c0_i32_0 = arith.constant 0 : i32
    return %arg0, %c0_i32 : i32, i32
  }
}

</mosaic_0001>

<bundles_post_ra>
// kernel: _pe_call_impl.1
= control target key start
LH: loop header
LB: loop body
LE: loop exit
PB: predicated region body
PF: predicated region fallthrough
CT: control target
= control target key end

     0   :  { %7 = vsyncpa [#allocation3], 0  ;;  %s179_s0 = inlined_call_operand.hbm [shape: f32[8,64], index: 0, kind: input, shape index: {}]   ;;  %s180_s1 = inlined_call_operand.hbm [shape: f32[8,32], index: 1, kind: input, shape index: {}]   ;;  %s181_s2 = inlined_call_operand.hbm [shape: f32[8,64], index: 2, kind: output, shape index: {}]  }
   0x1   :  { %8 = vsyncpa [#allocation6], 0 }
   0x2   :  { %9 = vsyncpa [#allocation4], 0  ;;  %s15_s11 = sshll.u32 %s179_s0, 4  ;;  %s151_s12 = smov [#allocation2]   ;;  %s16_s11 = int_to_ptr.hbm [resolvable:$true] %s15_s11 }
   0x3   :  { %s17_s13 = sshll.u32 %s151_s12, 4  ;;  %s26_s16 = sshll.u32 %s180_s1, 4  ;;  %s18_s13 = int_to_ptr.vmem [resolvable:$true] %s17_s13  ;;  %s27_s16 = int_to_ptr.hbm [resolvable:$true] %s26_s16 }
   0x4   :  { %20 = dma.hbm_to_vmem [thread:$0]  %s16_s11, 128, %s18_s13, [#allocation3]  }
   0x5   :  { %s152_s17 = smov [#allocation5]  }
   0x6   :  { %s28_s18 = sshll.u32 %s152_s17, 4  ;;  %s29_s18 = int_to_ptr.vmem [resolvable:$true] %s28_s18 }
   0x7   :  { %31 = dma.hbm_to_vmem [thread:$0]  %s27_s16, 128, %s29_s18, [#allocation6]  }
   0x8   :  { %145 = dma.done.wait [#allocation3], 128  }
   0x9   :  { %146 = vsyncadd [#allocation3], 4294967168 }
   0xa   :  { %147 = dma.done.wait [#allocation6], 128  }
   0xb   :  { %148 = vsyncadd [#allocation6], 4294967168  ;;  %v40_v0 = vld [vmem:[#allocation5] sm:$0xff]  ;;  %s153_s0 = smov 32   ;;  %vm45_vm0 = vcmask 261120   ;;  %v47_v1 = vld [vmem:[#allocation2] sm:$0xff] }
   0xc   :  { %42 = vrot.lane.b32.xlu0 %v40_v0, %s153_s0  ;;  %s154_s19 = smov [#allocation7]   ;;  %s58_s1 = sshll.u32 %s181_s2, 4  ;;  %vm49_vm1 = vcmask 523264   ;;  %s59_s1 = int_to_ptr.hbm [resolvable:$true] %s58_s1 }
   0xd   :  { %s56_s20 = sshll.u32 %s154_s19, 4  ;;  %s57_s20 = int_to_ptr.vmem [resolvable:$true] %s56_s20 }
  0x7e   :  { %v43_v2 = vpop.permute.xlu0 %42 }
  0x7f   :  { %v46_v3 = vsel %vm45_vm0, %v40_v0, %v43_v2 }
  0x80   :  { %v48_v4 = vadd.f32 %v47_v1, %v46_v3 }
  0x82   :  { %50 = vst.msk [vmem:[#allocation7] sm:$0xff] %vm49_vm1, %v48_v4 }
  0x83   :  { %61 = dma.vmem_to_hbm [thread:$0]  %s57_s20, 128, %s59_s1, [#allocation4]  }
  0x84   :  { %149 = dma.done.wait [#allocation4], 128  }
  0x85   :  { %150 = vsyncadd [#allocation4], 4294967168 }
  0x86   :  { %66 = vsyncpa [#allocation3], 1 }
  0x87   :  { %67 = vsyncpa [#allocation6], 1 }
  0x88   :  { %68 = vsyncpa [#allocation4], 1 }

</bundles_post_ra>
